<compile_context>
chip_gen: v5e
topology: v5e:2x2
jax: 0.10.0
libtpu: 0.0.40
codegen_flags: <defaults>
</compile_context>

<pallas_src>
import jax
import jax.numpy as jnp
from jax.experimental import pallas as pl
from jax.experimental.pallas import tpu as pltpu


def vit_image_encoder_kernel(x_ref, pos_ref, o_ref):
    # x_ref:   (tb, tn)  batch rows on sublanes, flattened patches*embed on lanes
    # pos_ref: (1, tn)   positional-embedding slice, sublane-broadcast over batch
    # o_ref:   (tb, tn)
    o_ref[...] = (x_ref[...] + pos_ref[...]).astype(o_ref.dtype)


def _sublane_multiple(dtype) -> int:
    # 8 rows per sublane tile for 4-byte dtypes, 16 for bf16/fp16, 32 for int8/fp8.
    return max(8, 32 // jnp.dtype(dtype).itemsize)


def _choose_tiles(B, L, dtype, *, tb_cap=512, tn_cap=8192, block_bytes_target=4 << 20):
    """Pick (tb, tn, grid_i, grid_j) targeting ~4 MiB blocks with a cdiv (masked) grid."""
    itemsize = jnp.dtype(dtype).itemsize
    sub = _sublane_multiple(dtype)

    # Sublane (batch) tile: full extent when small (always legal), else a bounded,
    # dtype-aware multiple; the cdiv grid masks any partial edge block.
    if B <= tb_cap:
        tb = B
    else:
        tb = max(sub, (tb_cap // sub) * sub)

    # Lane tile: bounded by the per-block byte budget, always a multiple of 128
    # unless it covers the whole lane axis (full extent is always legal).
    lane_budget = max(128, (block_bytes_target // max(1, tb * itemsize)) // 128 * 128)
    tn = min(tn_cap, lane_budget)
    if L <= tn:
        tn = L

    grid_i = pl.cdiv(B, tb)
    grid_j = pl.cdiv(L, tn)

    # v7x megacore: guarantee >=2 programs along a parallel axis (prefer splitting the
    # lane axis) so both TensorCores get work. Negligible cost on single-TC v5e/v6e.
    if grid_i * grid_j == 1 and L >= 256:
        tn = max(128, ((pl.cdiv(L, 2) + 127) // 128) * 128)
        grid_j = pl.cdiv(L, tn)

    return tb, tn, grid_i, grid_j


def vit_image_encoder_forward(x, pos_emb):
    """x: (B, num_patches, embedding_dim); pos_emb: (1, num_patches, embedding_dim)."""
    B, P, D = x.shape
    _, P_ref, D_ref = pos_emb.shape
    if D != D_ref:
        raise ValueError(f"Expected input channels {D_ref}, got {D}")
    if P != P_ref:
        raise ValueError(f"Expected {P_ref} patches, got {P}")

    L = P * D
    out_dtype = jnp.result_type(x.dtype, pos_emb.dtype)

    x2 = x.reshape(B, L)            # lane-dense view of (patches, embed)
    pos2 = pos_emb.reshape(1, L)

    tb, tn, grid_i, grid_j = _choose_tiles(B, L, x.dtype)

    x_isz = jnp.dtype(x.dtype).itemsize
    p_isz = jnp.dtype(pos_emb.dtype).itemsize
    o_isz = jnp.dtype(out_dtype).itemsize

    # Double-buffered x-in + out streams plus the resident pos slice, with headroom.
    vmem_need = 2 * (tb * tn * (x_isz + o_isz) + tn * p_isz) + (2 << 20)
    vmem_limit = int(min(48 << 20, max(32 << 20, vmem_need)))

    # Lane axis OUTER, batch axis INNER: pos block index (0, j) is constant across the
    # inner batch loop, so Pallas skips re-fetching pos from HBM on those steps.
    out = pl.pallas_call(
        vit_image_encoder_kernel,
        out_shape=jax.ShapeDtypeStruct((B, L), out_dtype),
        grid_spec=pl.GridSpec(
            grid=(grid_j, grid_i),
            in_specs=[
                pl.BlockSpec((tb, tn), lambda j, i: (i, j)),   # x tile
                pl.BlockSpec((1, tn), lambda j, i: (0, j)),    # pos slice (constant over i)
            ],
            out_specs=pl.BlockSpec((tb, tn), lambda j, i: (i, j)),
        ),
        compiler_params=pltpu.CompilerParams(
            dimension_semantics=("parallel", "parallel"),
            vmem_limit_bytes=vmem_limit,
        ),
        cost_estimate=pl.CostEstimate(
            flops=B * L,
            transcendentals=0,
            bytes_accessed=B * L * (x_isz + o_isz) + L * p_isz,
        ),
        input_output_aliases=({0: 0} if out_dtype == x.dtype else {}),
    )(x2, pos2)

    return out.reshape(B, P, D)


if __name__ == "__main__":
    key = jax.random.PRNGKey(0)
    k_x, k_p = jax.random.split(key)

    batch = 2
    patch_w, patch_h = 4, 4
    embedding_dim = 32
    num_patches = patch_w * patch_h  # 16

    x = jax.random.normal(k_x, (batch, num_patches, embedding_dim), jnp.float32)
    # nn.Parameter(torch.randn(1, num_patches, embedding_dim))
    pos_emb = jax.random.normal(k_p, (1, num_patches, embedding_dim), jnp.float32)

    out = vit_image_encoder_forward(x, pos_emb)
    out = jax.block_until_ready(out)

    # Pure-JAX reference of VitImageEncoder.forward.
    ref = x + pos_emb
    assert out.shape == (batch, num_patches, embedding_dim)
    assert jnp.allclose(out, ref, atol=1e-6, rtol=1e-6)

    print("KERNEL_OK")
</pallas_src>

<mosaic_0001>
module attributes {stable_mosaic.version = 11 : i64} {
  func.func @vit_image_encoder_kernel(%arg0: i32, %arg1: i32, %arg2: memref<2x256xf32, #tpu.memory_space<vmem>>, %arg3: memref<1x256xf32, #tpu.memory_space<vmem>>, %arg4: memref<2x256xf32, #tpu.memory_space<vmem>>) attributes {dimension_semantics = [#tpu.dimension_semantics<parallel>, #tpu.dimension_semantics<parallel>], iteration_bounds = array<i64: 2, 1>, scalar_prefetch = 0 : i64, scratch_operands = 0 : i64, tpu.core_type = #tpu.core_type<tc>, window_params = [{transform_indices = @transform_0, window_bounds = array<i64: 2, 256>}, {transform_indices = @transform_1, window_bounds = array<i64: 1, 256>}, {transform_indices = @transform_2, window_bounds = array<i64: 2, 256>}]} {
    %c0 = arith.constant 0 : index
    %c0_0 = arith.constant 0 : index
    %0 = vector.load %arg2[%c0, %c0_0] : memref<2x256xf32, #tpu.memory_space<vmem>>, vector<2x256xf32>
    %c0_1 = arith.constant 0 : index
    %c0_2 = arith.constant 0 : index
    %1 = vector.load %arg3[%c0_1, %c0_2] : memref<1x256xf32, #tpu.memory_space<vmem>>, vector<1x256xf32>
    %2 = vector.broadcast %1 : vector<1x256xf32> to vector<2x256xf32>
    %3 = arith.addf %0, %2 : vector<2x256xf32>
    %c0_3 = arith.constant 0 : index
    %c0_4 = arith.constant 0 : index
    %4 = vector.load %arg4[%c0_3, %c0_4] : memref<2x256xf32, #tpu.memory_space<vmem>>, vector<2x256xf32>
    tpu.vector_store %arg4[%c0_3, %c0_4], %3 {strides = array<i32>} : memref<2x256xf32, #tpu.memory_space<vmem>>, vector<2x256xf32>,
    return
  }
  func.func @transform_0(%arg0: i32, %arg1: i32) -> (i32, i32) {
    %c0_i32 = arith.constant 0 : i32
    return %arg1, %arg0 : i32, i32
  }
  func.func @transform_1(%arg0: i32, %arg1: i32) -> (i32, i32) {
    %c0_i32 = arith.constant 0 : i32
    %c0_i32_0 = arith.constant 0 : i32
    return %c0_i32, %arg0 : i32, i32
  }
  func.func @transform_2(%arg0: i32, %arg1: i32) -> (i32, i32) {
    %c0_i32 = arith.constant 0 : i32
    return %arg1, %arg0 : i32, i32
  }
}

</mosaic_0001>

<bundles_post_ra>
// kernel: tpu_custom_call.1
= control target key start
LH: loop header
LB: loop body
LE: loop exit
PB: predicated region body
PF: predicated region fallthrough
CT: control target
= control target key end

     0   :  { %7 = vsyncpa [#allocation3], 0  ;;  %s657_s0 = inlined_call_operand.hbm [shape: f32[2,512], index: 0, kind: input, shape index: {}, may-alias: {0,2}]   ;;  %s658_s1 = inlined_call_operand.vmem [shape: f32[1,512], index: 1, kind: input, shape index: {}]   ;;  %s659_s2 = inlined_call_operand.hbm [shape: f32[2,512], index: 2, kind: output, shape index: {}, may-alias: {0,2}]  }
   0x1   :  { %9 = vsyncpa [#allocation3 + $0x1], 0 }
   0x2   :  { %10 = vsyncpa [#allocation4], 0 }
   0x3   :  { %12 = vsyncpa [#allocation4 + $0x1], 0  ;;  %s533_s9 = smov 0   ;;  %s535_s10 = smov 0  }
   0x4   :  { %s537_s11 = smov 0   ;;  %s539_s12 = smov 0  }
   0x5   :  { %s541_s13 = smov 0   ;;  %s543_s14 = smov 0  }
   0x6 LB: > { %s324_s15 = sadd.s32 4294967295, %s516_s14   ;;  %s325_s16 = sadd.s32 4294967294, %s516_s14   ;;  %s516_s14 = sphi %s543_s14, %s18_s14   ;;  %s512_s13 = sphi %s541_s13, %s668_s13   ;;  %s508_s12 = sphi %s539_s12, %s667_s12   ;;  %s504_s11 = sphi %s537_s11, %s666_s11   ;;  %s500_s10 = sphi %s535_s10, %s665_s10   ;;  %s496_s9 = sphi %s533_s9, %s664_s9  }
   0x7   : > { %s30_s17 = sadd.s32 1, %s512_s13  ;;  %s39_s18 = sadd.s32 1, %s504_s11 }
   0x8   : > { %p32_p0 = scmp.ge.s32.totalorder %s30_s17, 2  ;;  %p46_p1 = scmp.ne.s32.totalorder %s504_s11, %s500_s10 }
   0x9   : > { %p47_p2 = scmp.eq.s32.totalorder %s516_s14, 0  ;;  %p52_p3 = scmp.ne.s32.totalorder %s500_s10, %s496_s9 }
   0xa   : > { %s670_s17 = smov (%p32_p0, %s30_s17), 0  ;;  %p53_p5 = scmp.eq.s32.totalorder %s324_s15, 0 }
   0xb   : > { %p574_p4 = por %p47_p2, %p46_p1  ;;  %s35_s20 = ssub.s32 %s512_s13, %s670_s17 }
   0xc   : > { %p104_p6 = scmp.eq.s32.totalorder %s324_s15, 1  ;;  %p37_p7 = scmp.eq.s32.totalorder %s35_s20, 0 }
   0xd   : > { %p580_p8 = por %p53_p5, %p52_p3  ;;  %p110_p10 = scmp.eq.s32.totalorder %s325_s16, 1 }
   0xe   : > { %p584_p9 = por %p104_p6, %p46_p1  ;;  %p327_p12 = scmp.ge.s32.totalorder %s516_s14, 2 }
   0xf   : > { %s589_s23 = scalar_select %p37_p7, %s504_s11, %s39_s18  }
  0x10   : > { %p591_p11 = por %p110_p10, %p52_p3  ;;  %p354_p13 = scmp.lt.s32.totalorder %s516_s14, 2 }
  0x11   : > { %s130_s25 = sand.u32 1, %s504_s11   ;;  %s340_s27 = sshll.u32 %s512_s13, 2 }
  0x12   : > { %s328_s26 = sshll.u32 %s130_s25, 2  ;;  %s141_s30 = scalar_lea.hbm %s657_s0, %s340_s27 }
  0x13   : > { %s134_s3 = scalar_lea.vmem [#allocation2], %s328_s26  ;;  %s143_s5 = sshll.u32 %s141_s30, 4  ;;  %s144_s5 = int_to_ptr.hbm [resolvable:$true] %s143_s5 }
  0x14   : > { %s145_s4 = sshll.u32 %s134_s3, 4  ;;  %p347_p0 = pnand %p354_p13, %p574_p4  ;;  %s146_s4 = int_to_ptr.vmem [resolvable:$true] %s145_s4 }
  0x15   : > { %p331_p1 = scmp.ge.s32.totalorder %s516_s14, 1  ;;  %p158_p2 = scmp.lt.s32.totalorder %s516_s14, 3 }
  0x16   : > { %s131_s6 = scalar_lea.sflag [#allocation3], %s130_s25 }
  0x17   : > { %349 = dma.hbm_to_vmem [thread:$0]  (!%p347_p0), %s144_s5, 64, %s146_s4, %s131_s6  }
  0x18   : > { %p159_p3 = pnand %p331_p1, %p158_p2 }
  0x19   : > { %s607_s7 = sand.u32 (!%p159_p3), 1, %s500_s10  }
  0x1a   : > { %162 = sbr.rel (%p159_p3) target bundleno = 49 (0x31), region = 28  ;;  %s332_s8 = sshll.u32 (!%p159_p3), %s607_s7, 2 }
  0x1b   : > { %s165_s15 = scalar_lea.sflag (!%p159_p3), [#allocation3], %s607_s7  ;;  %s168_s16 = scalar_lea.vmem (!%p159_p3), [#allocation2], %s332_s8 }
  0x1f   : > { %487 = dma.done.wait (%p580_p8), %s165_s15, 64  }
  0x20   : > { %489 = vsyncadd (%p580_p8), %s165_s15, 4294967232  ;;  %s334_s18 = sshll.u32 %s508_s12, 1  ;;  %s341_s19 = sshll.u32 %s508_s12, 2  ;;  %vm207_vm0 = vcmask 1041408   ;;  %v201_v3 = vld [vmem:[%s168_s16] sm:$0xf] }
  0x21   : > { %p196_p4 = scmp.lt.s32.totalorder %s334_s18, 3  ;;  %s226_s29 = scalar_lea.hbm %s659_s2, %s341_s19 }
  0x22   : > { %s193_s21 = scalar_lea.vmem [#allocation5], %s332_s8  ;;  %s230_s3 = sshll.u32 %s226_s29, 4  ;;  %s231_s3 = int_to_ptr.hbm [resolvable:$true] %s230_s3 }
  0x23   : > { %s672_s18 = smov (!%p196_p4, %s334_s18), 3  ;;  %s228_s30 = sshll.u32 %s193_s21, 4  ;;  %s229_s30 = int_to_ptr.vmem [resolvable:$true] %s228_s30 }
  0x24   : > { %s198_s26 = scalar_lea.vmem %s658_s1, %s672_s18  ;;  %s213_s12 = scalar_lea.sflag [#allocation4], %s607_s7 }
  0x25   : > { %v202_v0 = vld [vmem:[%s198_s26] sm:$0x3]  ;;  %s448_s4 = sshra.s32 %s231_s3, 4  ;;  %s454_s8 = scalar_lea.hbm %s659_s2, 8  ;;  %s449_s4 = int_to_ptr.hbm [resolvable:$true] %s448_s4 }
  0x26   : > { %v204_v1 = vperm.slane %v202_v0, 0  ;;  %v205_v2 = vperm.slane %v202_v0, 1  ;;  %s450_s5 = scalar_lea.hbm %s449_s4, 4  ;;  %p455_p8 = scmp.lt.s32.totalorder %s449_s4, %s659_s2 }
  0x27   : > { %p451_p5 = scmp.ne.s32.totalorder %s449_s4, %s450_s5  ;;  %p456_p10 = scmp.lt.s32.totalorder %s454_s8, %s450_s5 }
  0x28   : > { %v206_v4 = vrot.slane %v205_v2, 6 }
  0x29   : > { %p452_p6 = pnand %p451_p5, %p584_p9  ;;  %p457_p13 = por %p456_p10, %p455_p8 }
  0x2a   : > { %v208_v5 = vsel %vm207_vm0, %v204_v1, %v206_v4 }
  0x2b   : > { %v210_v6 = vadd.f32 %v208_v5, %v201_v3  ;;  %p453_p7 = pneg %p452_p6 }
  0x2d   : > { %211 = vst [vmem:[%s193_s21] sm:$0xf] %v210_v6  ;;  %p458_p0 = pnand %p457_p13, %p453_p7 }
  0x2f   : > { %461 = shalt.err (!%p458_p0)
}
  0x30   : > { %344 = dma.vmem_to_hbm [thread:$0]  (%p584_p9), %s229_s30, 64, %s231_s3, %s213_s12  }
  0x31 PF: > { %s242_s7 = sand.u32 1, %s496_s9   ;;  %p351_p1 = pnand %p327_p12, %p591_p11 }
  0x32   : > { %s243_s19 = scalar_lea.sflag [#allocation4], %s242_s7 }
  0x33   : > { %p352_p2 = pneg %p351_p1 }
  0x35   : > { %491 = dma.done.wait (%p352_p2), %s243_s19, 64  }
  0x36   : > { %493 = vsyncadd (%p352_p2), %s243_s19, 4294967232  ;;  %s18_s14 = sadd.s32 1, %s516_s14   ;;  %s664_s9 = smov %s500_s10 }
  0x37   : > { %p15_p3 = scmp.ge.s32.totalorder %s18_s14, 4   ;;  %s665_s10 = smov %s504_s11 }
  0x38   : > { %s666_s11 = smov %s589_s23  ;;  %s667_s12 = smov %s512_s13 }
  0x39   : > { %s668_s13 = smov %s670_s17  ;;  %17 = sbr.rel (!%p15_p3) target bundleno = 6 (0x6), region = 76 }
  0x3e   :  { %249 = vsyncpa [#allocation3], 1 }
  0x3f   :  { %251 = vsyncpa [#allocation3 + $0x1], 1 }
  0x40   :  { %252 = vsyncpa [#allocation4], 1 }
  0x41   :  { %254 = vsyncpa [#allocation4 + $0x1], 1 }

</bundles_post_ra>
